<compile_context>
chip_gen: v5e
topology: v5e:2x2
jax: 0.10.0
libtpu: 0.0.40
codegen_flags: <defaults>
</compile_context>

<pallas_src>
import functools

import jax
import jax.numpy as jnp
from jax.experimental import pallas as pl
from jax.experimental.pallas import tpu as pltpu


def _round_up(x, n):
    return -(-x // n) * n


def _pad2(a, shape):
    pads = [(0, s - d) for d, s in zip(a.shape, shape)]
    return jnp.pad(a, pads)


def _vmem_budget_bytes():
    """Generation-aware VMEM budget: 75% of physical per-core VMEM.

    ~48 MiB on v7x (64 MiB physical), ~96 MiB on v5e/v6e (128 MiB physical).
    Falls back to the conservative v7x number if the query is unavailable.
    """
    cap = 64 << 20
    try:
        info = pltpu.get_tpu_info()
        cap = int(getattr(info, "vmem_capacity_bytes", cap)) or cap
    except Exception:
        pass
    return (cap * 3) // 4


def hidden_kernel(x_ref, h_ref, d_ref, hid_ref):
    """hidden = tanh(d + x @ H), computed once per forward (not per vocab tile).

    Bias add + tanh stay f32 (v5e VPU/EUP lack bf16); output cast to bf16 so it
    streams straight into the MXU of the vocab-tile kernel.
    """
    h = jnp.tanh(
        d_ref[...]
        + jnp.dot(x_ref[...], h_ref[...], preferred_element_type=jnp.float32)
    )
    hid_ref[...] = h.astype(hid_ref.dtype)


def nnlm_tile_kernel(x_ref, hid_ref, w_ref, u_ref, b_ref, out_ref):
    """One vocab tile j: out[:, j*TN:(j+1)*TN] = b_j + x@W_j + hidden@U_j."""
    out_ref[...] = (
        b_ref[...]
        + jnp.dot(x_ref[...], w_ref[...], preferred_element_type=jnp.float32)
        + jnp.dot(hid_ref[...], u_ref[...], preferred_element_type=jnp.float32)
    )


def prepare_params(C, H, W, U, d, b, tn_target=8192, max_batch=256, min_tiles=2):
    """Pad & cast the static parameters ONCE, outside the per-call hot path.

    Zero padding is exact: padded K columns of x meet zero H/W rows, padded
    hidden columns are tanh(0)=0 against zero U rows, and padded vocab columns
    are sliced away after the kernel.
    """
    n_class, _ = C.shape
    K, n_hidden = H.shape
    Kp = max(128, _round_up(K, 128))
    Hp = max(128, _round_up(n_hidden, 128))
    Vp0 = max(128, _round_up(n_class, 128))
    Bp = max(16, _round_up(max_batch, 16))  # worst-case batch for the budget calc

    budget = _vmem_budget_bytes()

    def footprint(tn):
        # Resident bf16 x/hidden + double-buffered streamed W/U/b/out tiles,
        # plus a margin for compiler-internal scratch.
        resident = Bp * Kp * 2 + Bp * Hp * 2
        per_tile = Kp * tn * 2 + Hp * tn * 2 + tn * 4 + Bp * tn * 4
        return 2 * (resident + per_tile) + (4 << 20)

    # Largest 128-multiple tile (<= tn_target) that fits the VMEM budget.
    tn = 128
    for cand in range(128, max(128, tn_target) + 1, 128):
        if footprint(cand) <= budget:
            tn = cand
    tn = min(tn, Vp0)
    if min_tiles > 1:
        # Keep >= min_tiles vocab tiles so multi-TC chips (v7x) shard the axis.
        tn = min(tn, max(128, _round_up(-(-Vp0 // min_tiles), 128)))
    # Pad the vocab up to a multiple of tn (a few zero columns beat tn=128).
    Vp = _round_up(Vp0, tn)

    params = dict(
        C=C.astype(jnp.float32),                              # gathered per call
        H=_pad2(H.astype(jnp.bfloat16), (Kp, Hp)),
        W=_pad2(W.astype(jnp.bfloat16), (Kp, Vp)),
        U=_pad2(U.astype(jnp.bfloat16), (Hp, Vp)),
        d=_pad2(d.reshape(1, -1).astype(jnp.float32), (1, Hp)),
        b=_pad2(b.reshape(1, -1).astype(jnp.float32), (1, Vp)),
    )
    return params, n_class, tn


@functools.partial(jax.jit, static_argnames=("n_class", "tn"))
def nnlm_forward(X_idx, params, *, n_class, tn):
    """Forward pass. Embedding gather + x padding are the only per-call glue."""
    C, Hm, Wm, Um, dm, bm = (params[k] for k in ("C", "H", "W", "U", "d", "b"))
    B, n_step = X_idx.shape
    m = C.shape[1]
    K = n_step * m
    Kp, Hp = Hm.shape
    Vp = Wm.shape[1]
    Bp = max(16, _round_up(B, 16))   # 16-row sublane packing for bf16 activations

    # Glue: embedding lookup + view(-1, n_step*m), cast to bf16 for the MXU.
    # TODO(synk): could fold the row-gather into a PrefetchScalarGridSpec +
    # pl.Element kernel; negligible next to the W/U HBM stream at these sizes.
    x = jnp.take(C, X_idx, axis=0).reshape(B, K).astype(jnp.bfloat16)
    x_p = _pad2(x, (Bp, Kp))

    # Stage 1: hidden = tanh(d + x @ H), computed once (hoisted out of tiles).
    hidden = pl.pallas_call(
        hidden_kernel,
        out_shape=jax.ShapeDtypeStruct((Bp, Hp), jnp.bfloat16),
    )(x_p, Hm, dm)

    n_tiles = Vp // tn

    # Explicit VMEM budget: double-buffered streamed tiles + resident x/hidden,
    # capped at the generation-aware budget.
    resident = Bp * Kp * 2 + Bp * Hp * 2
    per_tile = Kp * tn * 2 + Hp * tn * 2 + tn * 4 + Bp * tn * 4
    vmem_bytes = int(min(max(2 * (resident + per_tile) + (4 << 20), 16 << 20),
                         _vmem_budget_bytes()))

    # Stage 2: stream W/U/b vocab tiles; x and hidden stay VMEM-resident
    # (constant index_map -> no re-DMA across grid steps).
    out_p = pl.pallas_call(
        nnlm_tile_kernel,
        out_shape=jax.ShapeDtypeStruct((Bp, Vp), jnp.float32),
        grid=(n_tiles,),
        in_specs=[
            pl.BlockSpec((Bp, Kp), lambda j: (0, 0)),   # x      : VMEM-resident
            pl.BlockSpec((Bp, Hp), lambda j: (0, 0)),   # hidden : VMEM-resident
            pl.BlockSpec((Kp, tn), lambda j: (0, j)),   # W tile : streamed
            pl.BlockSpec((Hp, tn), lambda j: (0, j)),   # U tile : streamed
            pl.BlockSpec((1, tn), lambda j: (0, j)),    # b tile : streamed
        ],
        out_specs=pl.BlockSpec((Bp, tn), lambda j: (0, j)),  # lane-dense output
        compiler_params=pltpu.CompilerParams(
            dimension_semantics=("parallel",),   # vocab tiles are independent
            vmem_limit_bytes=vmem_bytes,
        ),
    )(x_p, hidden, Wm, Um, bm)

    return out_p[:B, :n_class]


if __name__ == "__main__":
    # Mirror the original script's setup: 3 three-word sentences.
    sentences = ["i like dog", "i love coffee", "i hate milk"]
    word_list = sorted(set(" ".join(sentences).split()))  # deterministic order
    word_dict = {w: i for i, w in enumerate(word_list)}

    n_class = len(word_dict)  # vocab size (7)
    m = 2                     # embedding dim
    n_step = 2                # context length
    n_hidden = 2              # hidden dim

    # Input batch: first n_step words of each sentence as indices.
    X_idx = jnp.array(
        [[word_dict[w] for w in s.split()[:n_step]] for s in sentences],
        dtype=jnp.int32,
    )  # (batch=3, n_step=2)

    # Deterministic parameter init (torch.randn -> standard normal).
    key = jax.random.PRNGKey(0)
    kC, kH, kW, kd, kU, kb = jax.random.split(key, 6)
    C = jax.random.normal(kC, (n_class, m), dtype=jnp.float32)
    H = jax.random.normal(kH, (n_step * m, n_hidden), dtype=jnp.float32)
    W = jax.random.normal(kW, (n_step * m, n_class), dtype=jnp.float32)
    d = jax.random.normal(kd, (n_hidden,), dtype=jnp.float32)
    U = jax.random.normal(kU, (n_hidden, n_class), dtype=jnp.float32)
    b = jax.random.normal(kb, (n_class,), dtype=jnp.float32)

    # Pad/cast weights once, then run the forward.
    params, n_cls, tn = prepare_params(C, H, W, U, d, b)
    out = nnlm_forward(X_idx, params, n_class=n_cls, tn=tn)
    out = jax.block_until_ready(out)
    assert out.shape == (len(sentences), n_class)

    # Reference 1: same bf16-quantized weights, f32 math — tight-ish check.
    q = lambda a: a.astype(jnp.bfloat16).astype(jnp.float32)
    hi = jax.lax.Precision.HIGHEST
    xq = q(jnp.take(C, X_idx, axis=0).reshape(X_idx.shape[0], -1))
    hid = jnp.tanh(d + jnp.dot(xq, q(H), precision=hi))
    ref_q = (b + jnp.dot(xq, q(W), precision=hi)
               + jnp.dot(q(hid), q(U), precision=hi))
    assert jnp.allclose(out, ref_q, atol=2e-2, rtol=2e-2), \
        float(jnp.max(jnp.abs(out - ref_q)))

    # Reference 2: full-f32 PyTorch semantics — loose check (bf16 weight streaming).
    xr = jnp.take(C, X_idx, axis=0).reshape(X_idx.shape[0], -1)
    ref = b + xr @ W + jnp.tanh(d + xr @ H) @ U
    assert jnp.allclose(out, ref, atol=1.5e-1, rtol=5e-2), \
        float(jnp.max(jnp.abs(out - ref)))

    print("KERNEL_OK")
</pallas_src>

<mosaic_0001>
module attributes {stable_mosaic.version = 11 : i64} {
  func.func @hidden_kernel(%arg0: memref<16x128xbf16, #tpu.memory_space<vmem>>, %arg1: memref<128x128xbf16, #tpu.memory_space<vmem>>, %arg2: memref<1x128xf32, #tpu.memory_space<vmem>>, %arg3: memref<16x128xbf16, #tpu.memory_space<vmem>>) attributes {dimension_semantics = [], scalar_prefetch = 0 : i64, scratch_operands = 0 : i64, tpu.core_type = #tpu.core_type<tc>} {
    %c0 = arith.constant 0 : index
    %c0_0 = arith.constant 0 : index
    %0 = vector.load %arg2[%c0, %c0_0] : memref<1x128xf32, #tpu.memory_space<vmem>>, vector<1x128xf32>
    %c0_1 = arith.constant 0 : index
    %c0_2 = arith.constant 0 : index
    %1 = vector.load %arg0[%c0_1, %c0_2] : memref<16x128xbf16, #tpu.memory_space<vmem>>, vector<16x128xbf16>
    %c0_3 = arith.constant 0 : index
    %c0_4 = arith.constant 0 : index
    %2 = vector.load %arg1[%c0_3, %c0_4] : memref<128x128xbf16, #tpu.memory_space<vmem>>, vector<128x128xbf16>
    %cst = arith.constant dense<0.000000e+00> : vector<16x128xf32>
    %3 = tpu.matmul %1, %2, %cst {dimension_numbers = #tpu.dot_dimension_numbers<[1], [0], [0], [1], [0, 0, 1, 1], [], []>} : vector<16x128xbf16>, vector<128x128xbf16>, vector<16x128xf32> -> vector<16x128xf32>
    %4 = vector.broadcast %0 : vector<1x128xf32> to vector<16x128xf32>
    %5 = arith.addf %4, %3 : vector<16x128xf32>
    %6 = math.tanh %5 : vector<16x128xf32>
    %7 = arith.truncf %6 : vector<16x128xf32> to vector<16x128xbf16>
    %c0_5 = arith.constant 0 : index
    %c0_6 = arith.constant 0 : index
    %8 = vector.load %arg3[%c0_5, %c0_6] : memref<16x128xbf16, #tpu.memory_space<vmem>>, vector<16x128xbf16>
    tpu.vector_store %arg3[%c0_5, %c0_6], %7 {strides = array<i32>} : memref<16x128xbf16, #tpu.memory_space<vmem>>, vector<16x128xbf16>,
    return
  }
}

module attributes {stable_mosaic.version = 11 : i64} {
  func.func @nnlm_tile_kernel(%arg0: i32, %arg1: memref<16x128xbf16, #tpu.memory_space<vmem>>, %arg2: memref<16x128xbf16, #tpu.memory_space<vmem>>, %arg3: memref<128x128xbf16, #tpu.memory_space<vmem>>, %arg4: memref<128x128xbf16, #tpu.memory_space<vmem>>, %arg5: memref<1x128xf32, #tpu.memory_space<vmem>>, %arg6: memref<16x128xf32, #tpu.memory_space<vmem>>) attributes {dimension_semantics = [#tpu.dimension_semantics<parallel>], iteration_bounds = array<i64: 1>, scalar_prefetch = 0 : i64, scratch_operands = 0 : i64, tpu.core_type = #tpu.core_type<tc>, window_params = [{pipeline_mode = #tpu.pipeline_mode<synchronous>, transform_indices = @transform_0, window_bounds = array<i64: 16, 128>}, {pipeline_mode = #tpu.pipeline_mode<synchronous>, transform_indices = @transform_1, window_bounds = array<i64: 16, 128>}, {transform_indices = @transform_2, window_bounds = array<i64: 128, 128>}, {transform_indices = @transform_3, window_bounds = array<i64: 128, 128>}, {transform_indices = @transform_4, window_bounds = array<i64: 1, 128>}, {transform_indices = @transform_5, window_bounds = array<i64: 16, 128>}]} {
    %c0 = arith.constant 0 : index
    %c0_0 = arith.constant 0 : index
    %0 = vector.load %arg5[%c0, %c0_0] : memref<1x128xf32, #tpu.memory_space<vmem>>, vector<1x128xf32>
    %c0_1 = arith.constant 0 : index
    %c0_2 = arith.constant 0 : index
    %1 = vector.load %arg1[%c0_1, %c0_2] : memref<16x128xbf16, #tpu.memory_space<vmem>>, vector<16x128xbf16>
    %c0_3 = arith.constant 0 : index
    %c0_4 = arith.constant 0 : index
    %2 = vector.load %arg3[%c0_3, %c0_4] : memref<128x128xbf16, #tpu.memory_space<vmem>>, vector<128x128xbf16>
    %cst = arith.constant dense<0.000000e+00> : vector<16x128xf32>
    %3 = tpu.matmul %1, %2, %cst {dimension_numbers = #tpu.dot_dimension_numbers<[1], [0], [0], [1], [0, 0, 1, 1], [], []>} : vector<16x128xbf16>, vector<128x128xbf16>, vector<16x128xf32> -> vector<16x128xf32>
    %4 = vector.broadcast %0 : vector<1x128xf32> to vector<16x128xf32>
    %5 = arith.addf %4, %3 : vector<16x128xf32>
    %c0_5 = arith.constant 0 : index
    %c0_6 = arith.constant 0 : index
    %6 = vector.load %arg2[%c0_5, %c0_6] : memref<16x128xbf16, #tpu.memory_space<vmem>>, vector<16x128xbf16>
    %c0_7 = arith.constant 0 : index
    %c0_8 = arith.constant 0 : index
    %7 = vector.load %arg4[%c0_7, %c0_8] : memref<128x128xbf16, #tpu.memory_space<vmem>>, vector<128x128xbf16>
    %cst_9 = arith.constant dense<0.000000e+00> : vector<16x128xf32>
    %8 = tpu.matmul %6, %7, %cst_9 {dimension_numbers = #tpu.dot_dimension_numbers<[1], [0], [0], [1], [0, 0, 1, 1], [], []>} : vector<16x128xbf16>, vector<128x128xbf16>, vector<16x128xf32> -> vector<16x128xf32>
    %9 = arith.addf %5, %8 : vector<16x128xf32>
    %c0_10 = arith.constant 0 : index
    %c0_11 = arith.constant 0 : index
    %10 = vector.load %arg6[%c0_10, %c0_11] : memref<16x128xf32, #tpu.memory_space<vmem>>, vector<16x128xf32>
    tpu.vector_store %arg6[%c0_10, %c0_11], %9 {strides = array<i32>} : memref<16x128xf32, #tpu.memory_space<vmem>>, vector<16x128xf32>,
    return
  }
  func.func @transform_0(%arg0: i32) -> (i32, i32) {
    %c0_i32 = arith.constant 0 : i32
    %c0_i32_0 = arith.constant 0 : i32
    %c0_i32_1 = arith.constant 0 : i32
    return %c0_i32, %c0_i32_0 : i32, i32
  }
  func.func @transform_1(%arg0: i32) -> (i32, i32) {
    %c0_i32 = arith.constant 0 : i32
    %c0_i32_0 = arith.constant 0 : i32
    %c0_i32_1 = arith.constant 0 : i32
    return %c0_i32, %c0_i32_0 : i32, i32
  }
  func.func @transform_2(%arg0: i32) -> (i32, i32) {
    %c0_i32 = arith.constant 0 : i32
    %c0_i32_0 = arith.constant 0 : i32
    return %c0_i32, %arg0 : i32, i32
  }
  func.func @transform_3(%arg0: i32) -> (i32, i32) {
    %c0_i32 = arith.constant 0 : i32
    %c0_i32_0 = arith.constant 0 : i32
    return %c0_i32, %arg0 : i32, i32
  }
  func.func @transform_4(%arg0: i32) -> (i32, i32) {
    %c0_i32 = arith.constant 0 : i32
    %c0_i32_0 = arith.constant 0 : i32
    return %c0_i32, %arg0 : i32, i32
  }
  func.func @transform_5(%arg0: i32) -> (i32, i32) {
    %c0_i32 = arith.constant 0 : i32
    %c0_i32_0 = arith.constant 0 : i32
    return %c0_i32, %arg0 : i32, i32
  }
}

</mosaic_0001>

<bundles_post_ra>
// kernel: nnlm_forward.2
= control target key start
LH: loop header
LB: loop body
LE: loop exit
PB: predicated region body
PF: predicated region fallthrough
CT: control target
= control target key end

     0   :  { %s224_s1 = inlined_call_operand.vmem [shape: bf16[128,128], index: 1, kind: input, shape index: {}]   ;;  %s225_s2 = inlined_call_operand.vmem [shape: f32[1,128], index: 2, kind: input, shape index: {}]   ;;  %s226_s0 = inlined_call_operand.vmem [shape: bf16[16,128], index: 0, kind: input, shape index: {}]   ;;  %s227_s3 = inlined_call_operand.vmem [shape: bf16[16,128], index: 3, kind: output, shape index: {}]  }
   0x1   :  { %v160_v0 = vld [vmem:[%s224_s1 + $0x38] sm:$0xff]  ;;  %v159_v1 = vld [vmem:[%s224_s1 + $0x30] sm:$0xff]  ;;  %v158_v2 = vld [vmem:[%s224_s1 + $0x28] sm:$0xff] }
   0x2   :  { %87 = vmatpush.bf16.msra.mxu0 %v160_v0  ;;  %v157_v3 = vld [vmem:[%s224_s1 + $0x20] sm:$0xff]  ;;  %v156_v4 = vld [vmem:[%s224_s1 + $0x18] sm:$0xff]  ;;  %v155_v5 = vld [vmem:[%s224_s1 + $0x10] sm:$0xff] }
   0x3   :  { %v154_v6 = vld [vmem:[%s224_s1 + $0x8] sm:$0xff]  ;;  %v153_v7 = vld [vmem:[%s224_s1] sm:$0xff] }
   0x4   :  { %v152_v8 = vld [vmem:[%s226_s0] sm:$0xff] }
   0x5   :  { %v166_v10 = vld [vmem:[%s225_s2] ss:$0 sm:$0xff] }
   0x6   :  { %88 = vmatpush.bf16.msra.mxu0 %v159_v1 }
   0xa   :  { %89 = vmatpush.bf16.msra.mxu0 %v158_v2 }
   0xe   :  { %90 = vmatpush.bf16.msra.mxu0 %v157_v3 }
  0x12   :  { %91 = vmatpush.bf16.msra.mxu0 %v156_v4 }
  0x16   :  { %92 = vmatpush.bf16.msra.mxu0 %v155_v5 }
  0x1a   :  { %93 = vmatpush.bf16.msra.mxu0 %v154_v6 }
  0x1e   :  { %94 = vmatpush.bf16.msra.mxu0 %v153_v7 }
  0x21   :  { %95 = vmatmul.bf16.vlgmr.msra.gmra.mxu0 %v152_v8 }
  0x9e   :  { %v96_v9 = vpop.f32.mrf.mxu0 }
  0x9f   :  { %v104_v11 = vadd.f32 %v166_v10, %v96_v9 }
  0xa1   :  { %167 = vtanh.f32 %v104_v11 }
  0xa6   :  { %v98_v12 = vpop.f32.mrf.mxu0 }
  0xa7   :  { %v105_v13 = vadd.f32 %v166_v10, %v98_v12  ;;  %v168_v14 = vpop.eup %167 }
  0xa9   :  { %169 = vtanh.f32 %v105_v13 }
  0xaf   :  { %v170_v15 = vpop.eup %169 }
  0xb0   :  { %v164_v16 = vpack.c.bf16 %v170_v15, %v168_v14 }
  0xb2   :  { %165 = vst [vmem:[%s227_s3] sm:$0xff] %v164_v16  }

// kernel: nnlm_forward.3
= control target key start
LH: loop header
LB: loop body
LE: loop exit
PB: predicated region body
PF: predicated region fallthrough
CT: control target
= control target key end

     0   :  { %10 = vsyncpa [#allocation3], 0  ;;  %s442_s0 = inlined_call_operand.vmem [shape: bf16[16,128], index: 0, kind: input, shape index: {}]   ;;  %s443_s1 = inlined_call_operand.vmem [shape: bf16[16,128], index: 1, kind: input, shape index: {}]   ;;  %s444_s2 = inlined_call_operand.hbm [shape: bf16[128,128], index: 2, kind: input, shape index: {}]   ;;  %s445_s3 = inlined_call_operand.hbm [shape: bf16[128,128], index: 3, kind: input, shape index: {}]   ;;  %s446_s4 = inlined_call_operand.vmem [shape: f32[1,128], index: 4, kind: input, shape index: {}]   ;;  %s447_s5 = inlined_call_operand.vmem [shape: f32[16,128], index: 5, kind: output, shape index: {}]  }
   0x1   :  { %s20_s20 = sshll.u32 %s444_s2, 4  ;;  %s21_s20 = int_to_ptr.hbm [resolvable:$true] %s20_s20 }
   0x2   :  { %11 = vsyncpa [#allocation5], 0  ;;  %s387_s21 = smov [#allocation2]   ;;  %s33_s25 = sshll.u32 %s445_s3, 4  ;;  %s34_s25 = int_to_ptr.hbm [resolvable:$true] %s33_s25 }
   0x3   :  { %s22_s22 = sshll.u32 %s387_s21, 4  ;;  %s388_s26 = smov 64   ;;  %s23_s22 = int_to_ptr.vmem [resolvable:$true] %s22_s22 }
   0x4   :  { %s389_s27 = smov 4   ;;  %s390_s28 = smov [#allocation4]  }
   0x5   :  { %28 = dma.hbm_to_vmem [thread:$0]  %s21_s20, 1024, %s23_s22, [#allocation3], %s388_s26, %s388_s26, %s389_s27  }
   0x6   :  { %s35_s29 = sshll.u32 %s390_s28, 4  ;;  %s36_s29 = int_to_ptr.vmem [resolvable:$true] %s35_s29 }
   0x7   :  { %41 = dma.hbm_to_vmem [thread:$0]  %s34_s25, 1024, %s36_s29, [#allocation5], %s388_s26, %s388_s26, %s389_s27  }
   0x8   :  { %383 = dma.done.wait [#allocation3], 1024  }
   0x9   :  { %384 = vsyncadd [#allocation3], 4294966272 }
   0xa   :  { %385 = dma.done.wait [#allocation5], 1024  }
   0xb   :  { %386 = vsyncadd [#allocation5], 4294966272  ;;  %v320_v0 = vld [vmem:[#allocation2 + $0x38] sm:$0xff]  ;;  %v319_v2 = vld [vmem:[#allocation2 + $0x30] sm:$0xff] }
   0xc   :  { %v329_v1 = vld [vmem:[#allocation4 + $0x38] sm:$0xff]  ;;  %125 = vmatpush.bf16.msra.mxu0 %v320_v0  ;;  %v328_v3 = vld [vmem:[#allocation4 + $0x30] sm:$0xff]  ;;  %v318_v4 = vld [vmem:[#allocation2 + $0x28] sm:$0xff] }
   0xd   :  { %216 = vmatpush.bf16.msra.mxu1 %v329_v1  ;;  %v327_v5 = vld [vmem:[#allocation4 + $0x28] sm:$0xff]  ;;  %v317_v6 = vld [vmem:[#allocation2 + $0x20] sm:$0xff]  ;;  %v316_v8 = vld [vmem:[#allocation2 + $0x18] sm:$0xff] }
   0xe   :  { %v326_v7 = vld [vmem:[#allocation4 + $0x20] sm:$0xff]  ;;  %v325_v9 = vld [vmem:[#allocation4 + $0x18] sm:$0xff]  ;;  %v315_v10 = vld [vmem:[#allocation2 + $0x10] sm:$0xff] }
   0xf   :  { %v324_v11 = vld [vmem:[#allocation4 + $0x10] sm:$0xff]  ;;  %v314_v12 = vld [vmem:[#allocation2 + $0x8] sm:$0xff]  ;;  %v313_v14 = vld [vmem:[#allocation2] sm:$0xff] }
  0x10   :  { %126 = vmatpush.bf16.msra.mxu0 %v319_v2  ;;  %v323_v13 = vld [vmem:[#allocation4 + $0x8] sm:$0xff]  ;;  %v322_v15 = vld [vmem:[#allocation4] sm:$0xff] }
  0x11   :  { %217 = vmatpush.bf16.msra.mxu1 %v328_v3  ;;  %v312_v16 = vld [vmem:[%s442_s0] sm:$0xff] }
  0x12   :  { %v321_v17 = vld [vmem:[%s443_s1] sm:$0xff] }
  0x13   :  { %v334_v18 = vld [vmem:[%s446_s4] ss:$0 sm:$0xff] }
  0x14   :  { %127 = vmatpush.bf16.msra.mxu0 %v318_v4 }
  0x15   :  { %218 = vmatpush.bf16.msra.mxu1 %v327_v5 }
  0x18   :  { %128 = vmatpush.bf16.msra.mxu0 %v317_v6 }
  0x19   :  { %219 = vmatpush.bf16.msra.mxu1 %v326_v7 }
  0x1c   :  { %129 = vmatpush.bf16.msra.mxu0 %v316_v8 }
  0x1d   :  { %220 = vmatpush.bf16.msra.mxu1 %v325_v9 }
  0x20   :  { %130 = vmatpush.bf16.msra.mxu0 %v315_v10 }
  0x21   :  { %221 = vmatpush.bf16.msra.mxu1 %v324_v11 }
  0x24   :  { %131 = vmatpush.bf16.msra.mxu0 %v314_v12 }
  0x25   :  { %222 = vmatpush.bf16.msra.mxu1 %v323_v13 }
  0x28   :  { %132 = vmatpush.bf16.msra.mxu0 %v313_v14 }
  0x29   :  { %223 = vmatpush.bf16.msra.mxu1 %v322_v15 }
  0x2b   :  { %133 = vmatmul.bf16.vlgmr.msra.gmra.mxu0 %v312_v16 }
  0x2c   :  { %224 = vmatmul.bf16.vlgmr.msra.gmra.mxu1 %v321_v17 }
  0xa8   :  { %v134_v19 = vpop.f32.mrf.mxu0 }
  0xa9   :  { %v225_v20 = vpop.f32.mrf.mxu1  ;;  %v142_v21 = vadd.f32 %v334_v18, %v134_v19 }
  0xab   :  { %v230_v22 = vadd.f32 %v225_v20, %v142_v21 }
  0xad   :  { %232 = vst [vmem:[%s447_s5] sm:$0xff] %v230_v22 }
  0xb0   :  { %v136_v23 = vpop.f32.mrf.mxu0 }
  0xb1   :  { %v143_v24 = vadd.f32 %v334_v18, %v136_v23  ;;  %v227_v25 = vpop.f32.mrf.mxu1 }
  0xb3   :  { %v231_v26 = vadd.f32 %v227_v25, %v143_v24 }
  0xb5   :  { %233 = vst [vmem:[%s447_s5 + $0x8] sm:$0xff] %v231_v26 }
  0xb6   :  { %238 = vsyncpa [#allocation3], 1 }
  0xb7   :  { %239 = vsyncpa [#allocation5], 1 }

</bundles_post_ra>
